<compile_context>
chip_gen: v7x
topology: tpu7x:2x2x1
jax: 0.10.0
libtpu: 0.0.40
codegen_flags: <defaults>
</compile_context>

<pallas_src>
import jax
import jax.numpy as jnp
from jax.experimental import pallas as pl
from jax.experimental.pallas import tpu as pltpu


# ----------------------------------------------------------------------------
# Fused kernel: one grid step == one batch element.
# ----------------------------------------------------------------------------
def _mgce_kernel(x_ref, x0_ref, a_ref,
                 wk1_ref, b1_ref, wk2_ref, b2_ref,
                 wkr_ref, br_ref, wkd_ref, bd_ref,
                 f1_ref, f2_ref, f3_ref, bsum_ref,
                 o_ref):
    f32 = jnp.float32
    CN = o_ref.shape[1]          # c_out * N   (rows of an activation slab)
    F = o_ref.shape[2]           # feature_num (lane dim)

    def conv_bn_relu(slab, wk_ref, b_ref):
        # folded conv+BN as one matmul over the (tap,channel)*node rows
        h = jnp.dot(wk_ref[...], slab, preferred_element_type=f32)
        return jnp.maximum(h + b_ref[...], 0.0)

    # ---- conv1 + BN + ReLU (taps of the raw input pre-stacked in the wrapper)
    x1 = conv_bn_relu(x_ref[0], wk1_ref, b1_ref)                      # (CN, F)

    # ---- graph mixing: [AC;AD;AW] block-diag stacked -> one matmul + 3 linears
    m = jnp.dot(a_ref[0], x1, preferred_element_type=f32)             # (3CN, F)
    y = (jnp.dot(m[:CN], f1_ref[...], preferred_element_type=f32)
         + jnp.dot(m[CN:2 * CN], f2_ref[...], preferred_element_type=f32)
         + jnp.dot(m[2 * CN:], f3_ref[...], preferred_element_type=f32)
         + bsum_ref[...])

    # ---- 0/1 width-shift matrices emulating padding=(0,1), dilation=(1,2) taps
    r = jax.lax.broadcasted_iota(jnp.int32, (F, F), 0)
    c = jax.lax.broadcasted_iota(jnp.int32, (F, F), 1)
    shift_l = (c == r + 1).astype(f32)     # slab @ L -> left tap  (0 at w == 0)
    shift_r = (r == c + 1).astype(f32)     # slab @ R -> right tap (0 at w == F-1)

    def padded_taps(z):                    # (CN, F) -> (2*CN, F) = [tap0; tap1]
        return jnp.concatenate(
            [jnp.dot(z, shift_l, preferred_element_type=f32),
             jnp.dot(z, shift_r, preferred_element_type=f32)], axis=0)

    x2 = conv_bn_relu(padded_taps(y), wk2_ref, b2_ref)      # conv2 + BN + ReLU
    xres = conv_bn_relu(x0_ref[0], wkr_ref, br_ref)         # residual conv(X0)
    x3 = jnp.maximum(x2 + xres, 0.0)
    x4 = conv_bn_relu(padded_taps(x3), wkd_ref, bd_ref)     # convdown
    o_ref[0] = x4.astype(o_ref.dtype)


# ----------------------------------------------------------------------------
# Parameter init (deterministic, inference-mode BatchNorm) and BN folding
# ----------------------------------------------------------------------------
def init_conv_bn(key, cin, cout):
    k = jax.random.split(key, 6)
    return dict(
        w=0.3 * jax.random.normal(k[0], (cout, cin, 1, 2), jnp.float32),
        b=0.1 * jax.random.normal(k[1], (cout,), jnp.float32),
        gamma=1.0 + 0.1 * jax.random.normal(k[2], (cout,), jnp.float32),
        beta=0.1 * jax.random.normal(k[3], (cout,), jnp.float32),
        mean=0.1 * jax.random.normal(k[4], (cout,), jnp.float32),
        var=1.0 + 0.1 * jnp.abs(jax.random.normal(k[5], (cout,), jnp.float32)),
    )


def init_fc(key, f):
    k1, k2 = jax.random.split(key)
    return dict(w=0.2 * jax.random.normal(k1, (f, f), jnp.float32),
                b=0.1 * jax.random.normal(k2, (f,), jnp.float32))


def fold_conv_bn(p, eps=1e-5):
    scale = p["gamma"] / jnp.sqrt(p["var"] + eps)             # (Cout,)
    w0 = p["w"][:, :, 0, 0] * scale[:, None]                  # (Cout, Cin) tap 0
    w1 = p["w"][:, :, 0, 1] * scale[:, None]                  # (Cout, Cin) tap 1
    wcat = jnp.concatenate([w0, w1], axis=1)                  # (Cout, 2*Cin)
    bias = p["b"] * scale + p["beta"] - p["mean"] * scale     # (Cout,)
    return wcat, bias


def _blockdiag(a, nchan):
    """(B, N, N) -> (B, nchan*N, nchan*N) block-diagonal per-channel copies."""
    b, n, _ = a.shape
    eye = jnp.eye(nchan, dtype=a.dtype)
    return jnp.einsum("cd,bij->bcidj", eye, a).reshape(b, nchan * n, nchan * n)


# ----------------------------------------------------------------------------
# Full MGCE forward (one fused Pallas kernel) and pure-JAX reference
# ----------------------------------------------------------------------------
def mgce_forward(X0, X, AC0, AD0, AW0, params):
    B, Cin, N, Wp = X.shape
    F = Wp - 2
    Cout = params["conv1"]["w"].shape[0]
    CN = Cout * N

    # Tiny XLA-side prep (a few KB, done once per call).
    def tap_slab(x):
        xc = jnp.concatenate([x[..., :F], x[..., 2:]], axis=1)   # (B, 2Cin, N, F)
        return xc.reshape(B, 2 * Cin * N, F)

    Xs, X0s = tap_slab(X), tap_slab(X0)
    A_blk = jnp.concatenate(
        [_blockdiag(AC0, Cout), _blockdiag(AD0, Cout), _blockdiag(AW0, Cout)],
        axis=1)                                                  # (B, 3*CN, CN)

    def conv_operands(p):
        wcat, bias = fold_conv_bn(p)
        wk = jnp.kron(wcat, jnp.eye(N, dtype=wcat.dtype))        # (CN, K*N)
        return wk, jnp.repeat(bias, N).reshape(CN, 1)

    Wk1, b1 = conv_operands(params["conv1"])
    Wk2, b2 = conv_operands(params["conv2"])
    Wkr, br = conv_operands(params["convres"])
    Wkd, bd = conv_operands(params["convdown"])
    f1t = params["fc1"]["w"].T
    f2t = params["fc2"]["w"].T
    f3t = params["fc3"]["w"].T
    bsum = (params["fc1"]["b"] + params["fc2"]["b"]
            + params["fc3"]["b"]).reshape(1, F)

    x_spec = pl.BlockSpec((1, 2 * Cin * N, F), lambda b: (b, 0, 0))
    a_spec = pl.BlockSpec((1, 3 * CN, CN), lambda b: (b, 0, 0))

    def full_spec(arr):
        return pl.BlockSpec(arr.shape, lambda b, _n=arr.ndim: (0,) * _n)

    out = pl.pallas_call(
        _mgce_kernel,
        out_shape=jax.ShapeDtypeStruct((B, CN, F), jnp.float32),
        grid=(B,),
        in_specs=[x_spec, x_spec, a_spec,
                  full_spec(Wk1), full_spec(b1),
                  full_spec(Wk2), full_spec(b2),
                  full_spec(Wkr), full_spec(br),
                  full_spec(Wkd), full_spec(bd),
                  full_spec(f1t), full_spec(f2t), full_spec(f3t),
                  full_spec(bsum)],
        out_specs=pl.BlockSpec((1, CN, F), lambda b: (b, 0, 0)),
        compiler_params=pltpu.CompilerParams(
            dimension_semantics=("parallel",),
            vmem_limit_bytes=32 * 1024 * 1024),
    )(Xs, X0s, A_blk, Wk1, b1, Wk2, b2, Wkr, br, Wkd, bd, f1t, f2t, f3t, bsum)

    return out.reshape(B, Cout, N, F)


def _conv_bn_relu_ref(x, p, pad, eps=1e-5):
    if pad:
        x = jnp.pad(x, ((0, 0), (0, 0), (0, 0), (1, 1)))
    xl, xr = x[..., :-2], x[..., 2:]
    w0, w1 = p["w"][:, :, 0, 0], p["w"][:, :, 0, 1]          # (Cout, Cin)
    y = (jnp.einsum("bchw,oc->bohw", xl, w0)
         + jnp.einsum("bchw,oc->bohw", xr, w1)
         + p["b"][None, :, None, None])
    y = ((y - p["mean"][None, :, None, None])
         / jnp.sqrt(p["var"][None, :, None, None] + eps)
         * p["gamma"][None, :, None, None] + p["beta"][None, :, None, None])
    return jnp.maximum(y, 0.0)


def mgce_reference(X0, X, AC0, AD0, AW0, params):
    B = X.shape[0]
    X1 = _conv_bn_relu_ref(X, params["conv1"], pad=False)
    c, N, F = X1.shape[1], X1.shape[2], X1.shape[3]
    AC = jnp.broadcast_to(AC0[:, None], (B, c, N, N)).reshape(B * c, N, N)
    AD = jnp.broadcast_to(AD0[:, None], (B, c, N, N)).reshape(B * c, N, N)
    AW = jnp.broadcast_to(AW0[:, None], (B, c, N, N)).reshape(B * c, N, N)
    Xg = X1.reshape(B * c, N, F)
    lin = lambda p, x: x @ p["w"].T + p["b"]
    Y = (lin(params["fc1"], AC @ Xg) + lin(params["fc2"], AD @ Xg)
         + lin(params["fc3"], AW @ Xg))
    X2 = _conv_bn_relu_ref(Y.reshape(B, c, N, F), params["conv2"], pad=True)
    Xr = _conv_bn_relu_ref(X0, params["convres"], pad=False)
    X3 = jnp.maximum(X2 + Xr, 0.0)
    return _conv_bn_relu_ref(X3, params["convdown"], pad=True)


if __name__ == "__main__":
    B, c_in, c_out, N, F = 2, 4, 4, 8, 16   # N = graph nodes (H), F = feature_num
    W_in = F + 2                            # so dcnn2d1 output width == feature_num

    key = jax.random.PRNGKey(0)
    ks = jax.random.split(key, 12)
    X = jax.random.normal(ks[0], (B, c_in, N, W_in), jnp.float32)
    X0 = jax.random.normal(ks[1], (B, c_in, N, W_in), jnp.float32)
    AC0 = 0.3 * jax.random.normal(ks[2], (B, N, N), jnp.float32)
    AD0 = 0.3 * jax.random.normal(ks[3], (B, N, N), jnp.float32)
    AW0 = 0.3 * jax.random.normal(ks[4], (B, N, N), jnp.float32)

    params = dict(
        conv1=init_conv_bn(ks[5], c_in, c_out),
        conv2=init_conv_bn(ks[6], c_out, c_out),
        convres=init_conv_bn(ks[7], c_in, c_out),
        convdown=init_conv_bn(ks[8], c_out, c_out),
        fc1=init_fc(ks[9], F),
        fc2=init_fc(ks[10], F),
        fc3=init_fc(ks[11], F),
    )

    fwd = jax.jit(mgce_forward)
    out = jax.block_until_ready(fwd(X0, X, AC0, AD0, AW0, params))
    ref = mgce_reference(X0, X, AC0, AD0, AW0, params)
    assert out.shape == (B, c_out, N, F), out.shape
    assert jnp.allclose(out, ref, atol=2e-4, rtol=2e-4), \
        float(jnp.max(jnp.abs(out - ref)))
    print("KERNEL_OK")
</pallas_src>

<mosaic_0001>
module attributes {stable_mosaic.version = 11 : i64} {
  func.func @_mgce_kernel(%arg0: i32, %arg1: memref<1x64x16xf32, #tpu.memory_space<vmem>>, %arg2: memref<1x64x16xf32, #tpu.memory_space<vmem>>, %arg3: memref<1x96x32xf32, #tpu.memory_space<vmem>>, %arg4: memref<32x64xf32, #tpu.memory_space<vmem>>, %arg5: memref<32x1xf32, #tpu.memory_space<vmem>>, %arg6: memref<32x64xf32, #tpu.memory_space<vmem>>, %arg7: memref<32x1xf32, #tpu.memory_space<vmem>>, %arg8: memref<32x64xf32, #tpu.memory_space<vmem>>, %arg9: memref<32x1xf32, #tpu.memory_space<vmem>>, %arg10: memref<32x64xf32, #tpu.memory_space<vmem>>, %arg11: memref<32x1xf32, #tpu.memory_space<vmem>>, %arg12: memref<16x16xf32, #tpu.memory_space<vmem>>, %arg13: memref<16x16xf32, #tpu.memory_space<vmem>>, %arg14: memref<16x16xf32, #tpu.memory_space<vmem>>, %arg15: memref<1x16xf32, #tpu.memory_space<vmem>>, %arg16: memref<1x32x16xf32, #tpu.memory_space<vmem>>) attributes {dimension_semantics = [#tpu.dimension_semantics<parallel>], iteration_bounds = array<i64: 2>, scalar_prefetch = 0 : i64, scratch_operands = 0 : i64, tpu.core_type = #tpu.core_type<tc>, window_params = [{transform_indices = @transform_0, window_bounds = array<i64: 1, 64, 16>}, {transform_indices = @transform_1, window_bounds = array<i64: 1, 64, 16>}, {transform_indices = @transform_2, window_bounds = array<i64: 1, 96, 32>}, {pipeline_mode = #tpu.pipeline_mode<synchronous>, transform_indices = @transform_3, window_bounds = array<i64: 32, 64>}, {pipeline_mode = #tpu.pipeline_mode<synchronous>, transform_indices = @transform_4, window_bounds = array<i64: 32, 1>}, {pipeline_mode = #tpu.pipeline_mode<synchronous>, transform_indices = @transform_5, window_bounds = array<i64: 32, 64>}, {pipeline_mode = #tpu.pipeline_mode<synchronous>, transform_indices = @transform_6, window_bounds = array<i64: 32, 1>}, {pipeline_mode = #tpu.pipeline_mode<synchronous>, transform_indices = @transform_7, window_bounds = array<i64: 32, 64>}, {pipeline_mode = #tpu.pipeline_mode<synchronous>, transform_indices = @transform_8, window_bounds = array<i64: 32, 1>}, {pipeline_mode = #tpu.pipeline_mode<synchronous>, transform_indices = @transform_9, window_bounds = array<i64: 32, 64>}, {pipeline_mode = #tpu.pipeline_mode<synchronous>, transform_indices = @transform_10, window_bounds = array<i64: 32, 1>}, {pipeline_mode = #tpu.pipeline_mode<synchronous>, transform_indices = @transform_11, window_bounds = array<i64: 16, 16>}, {pipeline_mode = #tpu.pipeline_mode<synchronous>, transform_indices = @transform_12, window_bounds = array<i64: 16, 16>}, {pipeline_mode = #tpu.pipeline_mode<synchronous>, transform_indices = @transform_13, window_bounds = array<i64: 16, 16>}, {pipeline_mode = #tpu.pipeline_mode<synchronous>, transform_indices = @transform_14, window_bounds = array<i64: 1, 16>}, {transform_indices = @transform_15, window_bounds = array<i64: 1, 32, 16>}]} {
    %c0 = arith.constant 0 : index
    %c0_0 = arith.constant 0 : index
    %c0_1 = arith.constant 0 : index
    %0 = vector.load %arg1[%c0, %c0_0, %c0_1] : memref<1x64x16xf32, #tpu.memory_space<vmem>>, vector<1x64x16xf32>
    %1 = vector.shape_cast %0 : vector<1x64x16xf32> to vector<64x16xf32>
    %c0_2 = arith.constant 0 : index
    %c0_3 = arith.constant 0 : index
    %2 = vector.load %arg4[%c0_2, %c0_3] : memref<32x64xf32, #tpu.memory_space<vmem>>, vector<32x64xf32>
    %cst = arith.constant dense<0.000000e+00> : vector<32x16xf32>
    %3 = tpu.matmul %2, %1, %cst {dimension_numbers = #tpu.dot_dimension_numbers<[1], [0], [0], [1], [0, 0, 1, 1], [], []>} : vector<32x64xf32>, vector<64x16xf32>, vector<32x16xf32> -> vector<32x16xf32>
    %c0_4 = arith.constant 0 : index
    %c0_5 = arith.constant 0 : index
    %4 = vector.load %arg5[%c0_4, %c0_5] : memref<32x1xf32, #tpu.memory_space<vmem>>, vector<32x1xf32>
    %5 = vector.broadcast %4 : vector<32x1xf32> to vector<32x16xf32>
    %6 = arith.addf %3, %5 : vector<32x16xf32>
    %cst_6 = arith.constant 0.000000e+00 : f32
    %7 = vector.broadcast %cst_6 : f32 to vector<32x16xf32>
    %8 = arith.maximumf %6, %7 : vector<32x16xf32>
    %c0_7 = arith.constant 0 : index
    %c0_8 = arith.constant 0 : index
    %c0_9 = arith.constant 0 : index
    %9 = vector.load %arg3[%c0_7, %c0_8, %c0_9] : memref<1x96x32xf32, #tpu.memory_space<vmem>>, vector<1x96x32xf32>
    %10 = vector.shape_cast %9 : vector<1x96x32xf32> to vector<96x32xf32>
    %cst_10 = arith.constant dense<0.000000e+00> : vector<96x16xf32>
    %11 = tpu.matmul %10, %8, %cst_10 {dimension_numbers = #tpu.dot_dimension_numbers<[1], [0], [0], [1], [0, 0, 1, 1], [], []>} : vector<96x32xf32>, vector<32x16xf32>, vector<96x16xf32> -> vector<96x16xf32>
    %12 = vector.extract_strided_slice %11 {offsets = [0, 0], sizes = [32, 16], strides = [1, 1]} : vector<96x16xf32> to vector<32x16xf32>
    %c0_11 = arith.constant 0 : index
    %c0_12 = arith.constant 0 : index
    %13 = vector.load %arg12[%c0_11, %c0_12] : memref<16x16xf32, #tpu.memory_space<vmem>>, vector<16x16xf32>
    %cst_13 = arith.constant dense<0.000000e+00> : vector<32x16xf32>
    %14 = tpu.matmul %12, %13, %cst_13 {dimension_numbers = #tpu.dot_dimension_numbers<[1], [0], [0], [1], [0, 0, 1, 1], [], []>} : vector<32x16xf32>, vector<16x16xf32>, vector<32x16xf32> -> vector<32x16xf32>
    %15 = vector.extract_strided_slice %11 {offsets = [32, 0], sizes = [32, 16], strides = [1, 1]} : vector<96x16xf32> to vector<32x16xf32>
    %c0_14 = arith.constant 0 : index
    %c0_15 = arith.constant 0 : index
    %16 = vector.load %arg13[%c0_14, %c0_15] : memref<16x16xf32, #tpu.memory_space<vmem>>, vector<16x16xf32>
    %cst_16 = arith.constant dense<0.000000e+00> : vector<32x16xf32>
    %17 = tpu.matmul %15, %16, %cst_16 {dimension_numbers = #tpu.dot_dimension_numbers<[1], [0], [0], [1], [0, 0, 1, 1], [], []>} : vector<32x16xf32>, vector<16x16xf32>, vector<32x16xf32> -> vector<32x16xf32>
    %18 = arith.addf %14, %17 : vector<32x16xf32>
    %19 = vector.extract_strided_slice %11 {offsets = [64, 0], sizes = [32, 16], strides = [1, 1]} : vector<96x16xf32> to vector<32x16xf32>
    %c0_17 = arith.constant 0 : index
    %c0_18 = arith.constant 0 : index
    %20 = vector.load %arg14[%c0_17, %c0_18] : memref<16x16xf32, #tpu.memory_space<vmem>>, vector<16x16xf32>
    %cst_19 = arith.constant dense<0.000000e+00> : vector<32x16xf32>
    %21 = tpu.matmul %19, %20, %cst_19 {dimension_numbers = #tpu.dot_dimension_numbers<[1], [0], [0], [1], [0, 0, 1, 1], [], []>} : vector<32x16xf32>, vector<16x16xf32>, vector<32x16xf32> -> vector<32x16xf32>
    %22 = arith.addf %18, %21 : vector<32x16xf32>
    %c0_20 = arith.constant 0 : index
    %c0_21 = arith.constant 0 : index
    %23 = vector.load %arg15[%c0_20, %c0_21] : memref<1x16xf32, #tpu.memory_space<vmem>>, vector<1x16xf32>
    %24 = vector.broadcast %23 : vector<1x16xf32> to vector<32x16xf32>
    %25 = arith.addf %22, %24 : vector<32x16xf32>
    %26 = tpu.iota {dimensions = array<i32: 0>} : vector<16x16xi32>
    %27 = tpu.iota {dimensions = array<i32: 1>} : vector<16x16xi32>
    %c1_i32 = arith.constant 1 : i32
    %28 = vector.broadcast %c1_i32 : i32 to vector<16x16xi32>
    %29 = arith.addi %26, %28 : vector<16x16xi32>
    %30 = arith.cmpi eq, %27, %29 : vector<16x16xi32>
    %31 = arith.extui %30 : vector<16x16xi1> to vector<16x16xi32>
    %32 = arith.sitofp %31 : vector<16x16xi32> to vector<16x16xf32>
    %c1_i32_22 = arith.constant 1 : i32
    %33 = vector.broadcast %c1_i32_22 : i32 to vector<16x16xi32>
    %34 = arith.addi %27, %33 : vector<16x16xi32>
    %35 = arith.cmpi eq, %26, %34 : vector<16x16xi32>
    %36 = arith.extui %35 : vector<16x16xi1> to vector<16x16xi32>
    %37 = arith.sitofp %36 : vector<16x16xi32> to vector<16x16xf32>
    %cst_23 = arith.constant dense<0.000000e+00> : vector<32x16xf32>
    %38 = tpu.matmul %25, %32, %cst_23 {dimension_numbers = #tpu.dot_dimension_numbers<[1], [0], [0], [1], [0, 0, 1, 1], [], []>} : vector<32x16xf32>, vector<16x16xf32>, vector<32x16xf32> -> vector<32x16xf32>
    %cst_24 = arith.constant dense<0.000000e+00> : vector<32x16xf32>
    %39 = tpu.matmul %25, %37, %cst_24 {dimension_numbers = #tpu.dot_dimension_numbers<[1], [0], [0], [1], [0, 0, 1, 1], [], []>} : vector<32x16xf32>, vector<16x16xf32>, vector<32x16xf32> -> vector<32x16xf32>
    %40 = tpu.concatenate %38, %39 in 0 : vector<32x16xf32>, vector<32x16xf32> -> vector<64x16xf32>
    %c0_25 = arith.constant 0 : index
    %c0_26 = arith.constant 0 : index
    %41 = vector.load %arg6[%c0_25, %c0_26] : memref<32x64xf32, #tpu.memory_space<vmem>>, vector<32x64xf32>
    %cst_27 = arith.constant dense<0.000000e+00> : vector<32x16xf32>
    %42 = tpu.matmul %41, %40, %cst_27 {dimension_numbers = #tpu.dot_dimension_numbers<[1], [0], [0], [1], [0, 0, 1, 1], [], []>} : vector<32x64xf32>, vector<64x16xf32>, vector<32x16xf32> -> vector<32x16xf32>
    %c0_28 = arith.constant 0 : index
    %c0_29 = arith.constant 0 : index
    %43 = vector.load %arg7[%c0_28, %c0_29] : memref<32x1xf32, #tpu.memory_space<vmem>>, vector<32x1xf32>
    %44 = vector.broadcast %43 : vector<32x1xf32> to vector<32x16xf32>
    %45 = arith.addf %42, %44 : vector<32x16xf32>
    %cst_30 = arith.constant 0.000000e+00 : f32
    %46 = vector.broadcast %cst_30 : f32 to vector<32x16xf32>
    %47 = arith.maximumf %45, %46 : vector<32x16xf32>
    %c0_31 = arith.constant 0 : index
    %c0_32 = arith.constant 0 : index
    %c0_33 = arith.constant 0 : index
    %48 = vector.load %arg2[%c0_31, %c0_32, %c0_33] : memref<1x64x16xf32, #tpu.memory_space<vmem>>, vector<1x64x16xf32>
    %49 = vector.shape_cast %48 : vector<1x64x16xf32> to vector<64x16xf32>
    %c0_34 = arith.constant 0 : index
    %c0_35 = arith.constant 0 : index
    %50 = vector.load %arg8[%c0_34, %c0_35] : memref<32x64xf32, #tpu.memory_space<vmem>>, vector<32x64xf32>
    %cst_36 = arith.constant dense<0.000000e+00> : vector<32x16xf32>
    %51 = tpu.matmul %50, %49, %cst_36 {dimension_numbers = #tpu.dot_dimension_numbers<[1], [0], [0], [1], [0, 0, 1, 1], [], []>} : vector<32x64xf32>, vector<64x16xf32>, vector<32x16xf32> -> vector<32x16xf32>
    %c0_37 = arith.constant 0 : index
    %c0_38 = arith.constant 0 : index
    %52 = vector.load %arg9[%c0_37, %c0_38] : memref<32x1xf32, #tpu.memory_space<vmem>>, vector<32x1xf32>
    %53 = vector.broadcast %52 : vector<32x1xf32> to vector<32x16xf32>
    %54 = arith.addf %51, %53 : vector<32x16xf32>
    %cst_39 = arith.constant 0.000000e+00 : f32
    %55 = vector.broadcast %cst_39 : f32 to vector<32x16xf32>
    %56 = arith.maximumf %54, %55 : vector<32x16xf32>
    %57 = arith.addf %47, %56 : vector<32x16xf32>
    %cst_40 = arith.constant 0.000000e+00 : f32
    %58 = vector.broadcast %cst_40 : f32 to vector<32x16xf32>
    %59 = arith.maximumf %57, %58 : vector<32x16xf32>
    %cst_41 = arith.constant dense<0.000000e+00> : vector<32x16xf32>
    %60 = tpu.matmul %59, %32, %cst_41 {dimension_numbers = #tpu.dot_dimension_numbers<[1], [0], [0], [1], [0, 0, 1, 1], [], []>} : vector<32x16xf32>, vector<16x16xf32>, vector<32x16xf32> -> vector<32x16xf32>
    %cst_42 = arith.constant dense<0.000000e+00> : vector<32x16xf32>
    %61 = tpu.matmul %59, %37, %cst_42 {dimension_numbers = #tpu.dot_dimension_numbers<[1], [0], [0], [1], [0, 0, 1, 1], [], []>} : vector<32x16xf32>, vector<16x16xf32>, vector<32x16xf32> -> vector<32x16xf32>
    %62 = tpu.concatenate %60, %61 in 0 : vector<32x16xf32>, vector<32x16xf32> -> vector<64x16xf32>
    %c0_43 = arith.constant 0 : index
    %c0_44 = arith.constant 0 : index
    %63 = vector.load %arg10[%c0_43, %c0_44] : memref<32x64xf32, #tpu.memory_space<vmem>>, vector<32x64xf32>
    %cst_45 = arith.constant dense<0.000000e+00> : vector<32x16xf32>
    %64 = tpu.matmul %63, %62, %cst_45 {dimension_numbers = #tpu.dot_dimension_numbers<[1], [0], [0], [1], [0, 0, 1, 1], [], []>} : vector<32x64xf32>, vector<64x16xf32>, vector<32x16xf32> -> vector<32x16xf32>
    %c0_46 = arith.constant 0 : index
    %c0_47 = arith.constant 0 : index
    %65 = vector.load %arg11[%c0_46, %c0_47] : memref<32x1xf32, #tpu.memory_space<vmem>>, vector<32x1xf32>
    %66 = vector.broadcast %65 : vector<32x1xf32> to vector<32x16xf32>
    %67 = arith.addf %64, %66 : vector<32x16xf32>
    %cst_48 = arith.constant 0.000000e+00 : f32
    %68 = vector.broadcast %cst_48 : f32 to vector<32x16xf32>
    %69 = arith.maximumf %67, %68 : vector<32x16xf32>
    %c0_49 = arith.constant 0 : index
    %c0_50 = arith.constant 0 : index
    %c0_51 = arith.constant 0 : index
    %70 = vector.load %arg16[%c0_49, %c0_50, %c0_51] : memref<1x32x16xf32, #tpu.memory_space<vmem>>, vector<1x32x16xf32>
    %71 = vector.shape_cast %70 : vector<1x32x16xf32> to vector<32x16xf32>
    %72 = vector.shape_cast %69 : vector<32x16xf32> to vector<1x32x16xf32>
    tpu.vector_store %arg16[%c0_49, %c0_50, %c0_51], %72 {strides = array<i32>} : memref<1x32x16xf32, #tpu.memory_space<vmem>>, vector<1x32x16xf32>,
    return
  }
  func.func @transform_0(%arg0: i32) -> (i32, i32, i32) {
    %c0_i32 = arith.constant 0 : i32
    %c0_i32_0 = arith.constant 0 : i32
    %c0_i32_1 = arith.constant 0 : i32
    return %arg0, %c0_i32, %c0_i32_0 : i32, i32, i32
  }
  func.func @transform_1(%arg0: i32) -> (i32, i32, i32) {
    %c0_i32 = arith.constant 0 : i32
    %c0_i32_0 = arith.constant 0 : i32
    %c0_i32_1 = arith.constant 0 : i32
    return %arg0, %c0_i32, %c0_i32_0 : i32, i32, i32
  }
  func.func @transform_2(%arg0: i32) -> (i32, i32, i32) {
    %c0_i32 = arith.constant 0 : i32
    %c0_i32_0 = arith.constant 0 : i32
    %c0_i32_1 = arith.constant 0 : i32
    return %arg0, %c0_i32, %c0_i32_0 : i32, i32, i32
  }
  func.func @transform_3(%arg0: i32) -> (i32, i32) {
    %c0_i32 = arith.constant 0 : i32
    %c0_i32_0 = arith.constant 0 : i32
    %c0_i32_1 = arith.constant 0 : i32
    return %c0_i32, %c0_i32_0 : i32, i32
  }
  func.func @transform_4(%arg0: i32) -> (i32, i32) {
    %c0_i32 = arith.constant 0 : i32
    %c0_i32_0 = arith.constant 0 : i32
    %c0_i32_1 = arith.constant 0 : i32
    return %c0_i32, %c0_i32_0 : i32, i32
  }
  func.func @transform_5(%arg0: i32) -> (i32, i32) {
    %c0_i32 = arith.constant 0 : i32
    %c0_i32_0 = arith.constant 0 : i32
    %c0_i32_1 = arith.constant 0 : i32
    return %c0_i32, %c0_i32_0 : i32, i32
  }
  func.func @transform_6(%arg0: i32) -> (i32, i32) {
    %c0_i32 = arith.constant 0 : i32
    %c0_i32_0 = arith.constant 0 : i32
    %c0_i32_1 = arith.constant 0 : i32
    return %c0_i32, %c0_i32_0 : i32, i32
  }
  func.func @transform_7(%arg0: i32) -> (i32, i32) {
    %c0_i32 = arith.constant 0 : i32
    %c0_i32_0 = arith.constant 0 : i32
    %c0_i32_1 = arith.constant 0 : i32
    return %c0_i32, %c0_i32_0 : i32, i32
  }
  func.func @transform_8(%arg0: i32) -> (i32, i32) {
    %c0_i32 = arith.constant 0 : i32
    %c0_i32_0 = arith.constant 0 : i32
    %c0_i32_1 = arith.constant 0 : i32
    return %c0_i32, %c0_i32_0 : i32, i32
  }
  func.func @transform_9(%arg0: i32) -> (i32, i32) {
    %c0_i32 = arith.constant 0 : i32
    %c0_i32_0 = arith.constant 0 : i32
    %c0_i32_1 = arith.constant 0 : i32
    return %c0_i32, %c0_i32_0 : i32, i32
  }
  func.func @transform_10(%arg0: i32) -> (i32, i32) {
    %c0_i32 = arith.constant 0 : i32
    %c0_i32_0 = arith.constant 0 : i32
    %c0_i32_1 = arith.constant 0 : i32
    return %c0_i32, %c0_i32_0 : i32, i32
  }
  func.func @transform_11(%arg0: i32) -> (i32, i32) {
    %c0_i32 = arith.constant 0 : i32
    %c0_i32_0 = arith.constant 0 : i32
    %c0_i32_1 = arith.constant 0 : i32
    return %c0_i32, %c0_i32_0 : i32, i32
  }
  func.func @transform_12(%arg0: i32) -> (i32, i32) {
    %c0_i32 = arith.constant 0 : i32
    %c0_i32_0 = arith.constant 0 : i32
    %c0_i32_1 = arith.constant 0 : i32
    return %c0_i32, %c0_i32_0 : i32, i32
  }
  func.func @transform_13(%arg0: i32) -> (i32, i32) {
    %c0_i32 = arith.constant 0 : i32
    %c0_i32_0 = arith.constant 0 : i32
    %c0_i32_1 = arith.constant 0 : i32
    return %c0_i32, %c0_i32_0 : i32, i32
  }
  func.func @transform_14(%arg0: i32) -> (i32, i32) {
    %c0_i32 = arith.constant 0 : i32
    %c0_i32_0 = arith.constant 0 : i32
    %c0_i32_1 = arith.constant 0 : i32
    return %c0_i32, %c0_i32_0 : i32, i32
  }
  func.func @transform_15(%arg0: i32) -> (i32, i32, i32) {
    %c0_i32 = arith.constant 0 : i32
    %c0_i32_0 = arith.constant 0 : i32
    %c0_i32_1 = arith.constant 0 : i32
    return %arg0, %c0_i32, %c0_i32_0 : i32, i32, i32
  }
}

</mosaic_0001>

<bundles_post_ra>
// kernel: mgce_forward.1
= control target key start
LH: loop header
LB: loop body
LE: loop exit
PB: predicated region body
PF: predicated region fallthrough
CT: control target
= control target key end

     0   :  { %s3079_s0 = inlined_call_operand.vmem [shape: f32[2,64,16], index: 0, kind: input, shape index: {}]   ;;  %s3080_s1 = inlined_call_operand.vmem [shape: f32[2,64,16], index: 1, kind: input, shape index: {}]   ;;  %s3081_s2 = inlined_call_operand.vmem [shape: f32[2,96,32], index: 2, kind: input, shape index: {}]   ;;  %s3082_s3 = inlined_call_operand.vmem [shape: f32[32,64], index: 3, kind: input, shape index: {}]   ;;  %s3083_s4 = inlined_call_operand.vmem [shape: f32[32,1], index: 4, kind: input, shape index: {}]   ;;  %s3084_s5 = inlined_call_operand.vmem [shape: f32[32,64], index: 5, kind: input, shape index: {}]   ;;  %s3085_s6 = inlined_call_operand.vmem [shape: f32[32,1], index: 6, kind: input, shape index: {}]   ;;  %s3086_s7 = inlined_call_operand.vmem [shape: f32[32,64], index: 7, kind: input, shape index: {}]   ;;  %s3087_s8 = inlined_call_operand.vmem [shape: f32[32,1], index: 8, kind: input, shape index: {}]   ;;  %s3088_s9 = inlined_call_operand.vmem [shape: f32[32,64], index: 9, kind: input, shape index: {}]   ;;  %s3089_s10 = inlined_call_operand.vmem [shape: f32[32,1], index: 10, kind: input, shape index: {}]   ;;  %s3090_s11 = inlined_call_operand.vmem [shape: f32[16,16], index: 11, kind: input, shape index: {}]   ;;  %s3091_s12 = inlined_call_operand.vmem [shape: f32[16,16], index: 12, kind: input, shape index: {}]   ;;  %s3092_s13 = inlined_call_operand.vmem [shape: f32[16,16], index: 13, kind: input, shape index: {}]   ;;  %s3093_s14 = inlined_call_operand.vmem [shape: f32[1,16], index: 14, kind: input, shape index: {}]   ;;  %s3094_s15 = inlined_call_operand.hbm [shape: f32[2,32,16], index: 15, kind: output, shape index: {}]  }
   0x1   :  { %3100 = sst [smem:[#allocation9_spill]] %s3079_s0 }
   0x2   :  { %20 = vsyncpa [#allocation3], 0 }
   0x3   :  { %22 = vsyncpa [#allocation3 + $0x1], 0  ;;  %s2729_s18 = smov 0   ;;  %s2731_s19 = smov 0  }
   0x4   :  { %s2733_s20 = smov 0   ;;  %s2735_s21 = smov 0  }
   0x5 LB: > { %3101 = sst [smem:[#allocation5_spill]] %s2638_s20  ;;  %s2750_s22 = sadd.s32 4294967295, %s2642_s21   ;;  %s2642_s21 = sphi %s2735_s21, %s3114_s21   ;;  %s2638_s20 = sphi %s2733_s20, %s3116_s20   ;;  %s2634_s19 = sphi %s2731_s19, %s3118_s19   ;;  %s2630_s18 = sphi %s2729_s18, %s3117_s18  }
   0x6   : > { %s2049_s23 = sadd.s32 4294967294, %s2642_s21   ;;  %s2754_s24 = sadd.s32 1, %s2642_s21  }
   0x7   : > { %3102 = sst [smem:[#allocation6_spill]] %s2754_s24  ;;  %s365_s25 = sadd.s32 1, %s2638_s20 }
   0x8   : > { %s362_s26 = ssub.s32 %s2642_s21, %s2754_s24  ;;  %p375_p0 = scmp.ne.s32.totalorder %s2638_s20, %s2634_s19 }
   0x9   : > { %p363_p1 = scmp.eq.s32.totalorder %s362_s26, 0  ;;  %p376_p2 = scmp.eq.s32.totalorder %s2750_s22, 1 }
   0xa   : > { %p381_p3 = scmp.ne.s32.totalorder %s2634_s19, %s2630_s18  ;;  %p382_p4 = scmp.eq.s32.totalorder %s2049_s23, 1 }
   0xb   : > { %s2765_s27 = scalar_select %p363_p1, %s2638_s20, %s365_s25  }
   0xc   : > { %p2767_p5 = por %p376_p2, %p375_p0  ;;  %p2771_p6 = por %p382_p4, %p381_p3 }
   0xd   : > { %3103 = sst [smem:[#allocation7_spill]] %s2765_s27  ;;  %p2052_p7 = scmp.ge.s32.totalorder %s2642_s21, 1 }
   0xe   : > { %s3105_s29 = scalar_select %p2771_p6, 1, 0 }
   0xf   : > { %p460_p8 = scmp.lt.s32.totalorder %s2642_s21, 3 }
  0x10   : > { %3106 = sst [smem:[#allocation8_spill]] %s3105_s29 }
  0x11   : > { %p461_p9 = pnand %p2052_p7, %p460_p8 }
  0x12   : > { %p518_p10 = scmp.lt.s32.totalorder (!%p461_p9), %s2750_s22, 1  ;;  %v541_v0 = vld [vmem:[%s3082_s3] sm:$0xff] (!%p461_p9)  ;;  %vm569_vm0 = vcmask (!%p461_p9), 523264   ;;  %v2644_v1 = vmov (!%p461_p9), 0   ;;  %v547_v3 = vld [vmem:[%s3083_s4 + $0x10] sm:$0xff] (!%p461_p9)  ;;  %v546_v4 = vld [vmem:[%s3083_s4 + $0x8] sm:$0xff] (!%p461_p9) }
  0x13   : > { %464 = sbr.rel (%p461_p9) target bundleno = 1644 (0x66c), region = 80  ;;  %2258 = vmatprep.mubr.msk.f32.mxu0 (!%p461_p9), %vm569_vm0, %v541_v0  ;;  %2578 = vset.pattern.permute.xlu0 (!%p461_p9), %v2644_v1  ;;  %v545_v2 = vld [vmem:[%s3083_s4] sm:$0xff] (!%p461_p9)  ;;  %v548_v5 = vld [vmem:[%s3083_s4 + $0x18] sm:$0xff] (!%p461_p9)  ;;  %s3107_s0 = sld [smem:[#allocation9_spill]] (!%p461_p9)  ;;  %v1365_v17 = vld [vmem:[%s3085_s6 + $0x8] sm:$0xff] (!%p461_p9)  ;;  %vm683_vm1 = vcmask (!%p461_p9), 261120  }
  0x14   : > { %551 = vperm.xlu0 (!%p461_p9), %2578, %v545_v2   ;;  %2579 = vset.pattern.permute.xlu1 (!%p461_p9), %v2644_v1  ;;  %v1364_v11 = vld [vmem:[%s3085_s6] sm:$0xff] (!%p461_p9)  ;;  %v1502_v20 = vld [vmem:[%s3087_s8 + $0x8] sm:$0xff] (!%p461_p9)  ;;  %v1366_v22 = vld [vmem:[%s3085_s6 + $0x10] sm:$0xff] (!%p461_p9)  ;;  %vm849_vm2 = vcmask (!%p461_p9), 130048   ;;  %s515_s17 = sand.u32 (!%p461_p9), 1, %s2634_s19   ;;  %s2135_s30 = sshll.u32 (!%p461_p9), %s2750_s22, 9 }
  0x15   : > { %561 = vperm.xlu1 (!%p461_p9), %2579, %v547_v3   ;;  %v1501_v15 = vld [vmem:[%s3087_s8] sm:$0xff] (!%p461_p9)  ;;  %v1503_v23 = vld [vmem:[%s3087_s8 + $0x10] sm:$0xff] (!%p461_p9)  ;;  %v1367_v24 = vld [vmem:[%s3085_s6 + $0x18] sm:$0xff] (!%p461_p9)  ;;  %s2053_s23 = sshll.u32 (!%p461_p9), %s515_s17, 5 }
  0x16   : > { %v1504_v25 = vld [vmem:[%s3087_s8 + $0x18] sm:$0xff] (!%p461_p9)  ;;  %v542_v26 = vld [vmem:[%s3082_s3 + $0x8] sm:$0xff] (!%p461_p9)  ;;  %v543_v27 = vld [vmem:[%s3082_s3 + $0x10] sm:$0xff] (!%p461_p9)  ;;  %s517_s26 = scalar_lea.vmem (!%p461_p9), [#allocation2], %s2053_s23 }
  0x17   : > { %v1820_v28 = vld [vmem:[%s3089_s10] sm:$0xff] (!%p461_p9)  ;;  %v1821_v29 = vld [vmem:[%s3089_s10 + $0x8] sm:$0xff] (!%p461_p9)  ;;  %v544_v30 = vld [vmem:[%s3082_s3 + $0x18] sm:$0xff] (!%p461_p9) }
  0x18   : > { %556 = vperm.xlu0 (!%p461_p9), %2578, %v546_v4   ;;  %v1822_v31 = vld [vmem:[%s3089_s10 + $0x10] sm:$0xff] (!%p461_p9)  ;;  %v1823_v32 = vld [vmem:[%s3089_s10 + $0x18] sm:$0xff] (!%p461_p9)  ;;  %v845_v34 = vld [vmem:[%s3090_s11] sm:$0xff] (!%p461_p9) }
  0x19   : > { %566 = vperm.xlu1 (!%p461_p9), %2579, %v548_v5   ;;  %v846_v35 = vld [vmem:[%s3090_s11 + $0x8] sm:$0xff] (!%p461_p9)  ;;  %v847_v53 = vld [vmem:[%s3091_s12] sm:$0xff] (!%p461_p9) }
  0x1a   : > { %s2789_s27 = scalar_select %p518_p10, %s2750_s22, 1  ;;  %v2454_v36 = vpack.c.bf16 %v846_v35, %v845_v34  ;;  %v848_v54 = vld [vmem:[%s3091_s12 + $0x8] sm:$0xff]  ;;  %v1044_v5 = vld [vmem:[%s3092_s13] sm:$0xff] }
  0x1b   : > { %v2450_v57 = vpack.c.bf16 %v848_v54, %v847_v53  ;;  %s3038_s22 = scalar_lea.sflag [#allocation3], %s515_s17 }
  0x1c   : > { %s3099_s20 = sshll.u32 %s2789_s27, 6  ;;  %1370 = vperm.xlu0 %2578, %v1364_v11   ;;  %s2534_s24 = smul.u32 96, %s2789_s27 }
  0x1d   : > { %s522_s25 = scalar_lea.vmem %s3107_s0, %s3099_s20  ;;  %1507 = vperm.xlu1 %2579, %v1501_v15  }
  0x1e   : > { %v533_v6 = vld [vmem:[%s522_s25] sm:$0xff]  ;;  %v534_v7 = vld [vmem:[%s522_s25 + $0x8] sm:$0xff]  ;;  %v535_v8 = vld [vmem:[%s522_s25 + $0x10] sm:$0xff]  ;;  %s2855_s16 = scalar_lea.vmem %s3081_s2, %s2534_s24  ;;  %s3034_s24 = scalar_lea.hbm %s3094_s15, %s2135_s30 }
  0x1f   : > { %v2426_v9 = vpack.c.bf16 %v534_v7, %v533_v6  ;;  %v536_v10 = vld [vmem:[%s522_s25 + $0x18] sm:$0xff]  ;;  %v537_v13 = vld [vmem:[%s522_s25 + $0x20] sm:$0xff]  ;;  %v538_v14 = vld [vmem:[%s522_s25 + $0x28] sm:$0xff] }
  0x20   : > { %v2430_v12 = vpack.c.bf16 %v536_v10, %v535_v8  ;;  %v2434_v16 = vpack.c.bf16 %v538_v14, %v537_v13  ;;  %v539_v18 = vld [vmem:[%s522_s25 + $0x30] sm:$0xff]  ;;  %v540_v19 = vld [vmem:[%s522_s25 + $0x38] sm:$0xff]  ;;  %1375 = vperm.xlu0 %2578, %v1365_v17   ;;  %v671_v33 = vld [vmem:[%s2855_s16] sm:$0xff] }
  0x21   : > { %2427 = vmatprep.subr.bf16.mxu0 %v2426_v9  ;;  %v2438_v21 = vpack.c.bf16 %v540_v19, %v539_v18  ;;  %1512 = vperm.xlu1 %2579, %v1502_v20   ;;  %v672_v58 = vld [vmem:[%s2855_s16 + $0x8] sm:$0xff]  ;;  %v673_v59 = vld [vmem:[%s2855_s16 + $0x10] sm:$0xff]  ;;  %v674_v60 = vld [vmem:[%s2855_s16 + $0x18] sm:$0xff]  ;;  %v1158_v20 = vlaneseq }
  0x22   : > { %2429 = vmatpush3.bf16.msra.mxu0 %v2426_v9  ;;  %2272 = vmatprep.mubr.msk.f32.mxu1 %vm683_vm1, %v671_v33  ;;  %v675_v61 = vld [vmem:[%s2855_s16 + $0x20] sm:$0xff]  ;;  %v676_v62 = vld [vmem:[%s2855_s16 + $0x28] sm:$0xff]  ;;  %v677_v63 = vld [vmem:[%s2855_s16 + $0x30] sm:$0xff] }
  0x23   : > { %2431 = vmatprep.subr.bf16.mxu0 %v2430_v12  ;;  %v678_v0 = vld [vmem:[%s2855_s16 + $0x38] sm:$0xff]  ;;  %v679_v1 = vld [vmem:[%s2855_s16 + $0x40] sm:$0xff]  ;;  %v680_v2 = vld [vmem:[%s2855_s16 + $0x48] sm:$0xff] }
  0x24   : > { %1380 = vperm.xlu0 %2578, %v1366_v22   ;;  %v681_v3 = vld [vmem:[%s2855_s16 + $0x50] sm:$0xff]  ;;  %v682_v4 = vld [vmem:[%s2855_s16 + $0x58] sm:$0xff]  ;;  %v1045_v6 = vld [vmem:[%s3092_s13 + $0x8] sm:$0xff]  ;;  %s3112_s16 = sshll.u32 %s2789_s27, 6  ;;  %s2646_s27 = smov [#allocation2]  }
  0x25   : > { %1517 = vperm.xlu1 %2579, %v1503_v23   ;;  %v2458_v7 = vpack.c.bf16 %v1045_v6, %v1044_v5  ;;  %v1162_v23 = vand.u32 127, %v1158_v20  ;;  %s2933_s20 = scalar_lea.vmem %s3080_s1, %s3112_s16  ;;  %s1963_s16 = sshll.u32 %s517_s26, 4  ;;  %s3029_s16 = int_to_ptr.vmem [resolvable:$true] %s1963_s16 }
  0x26   : > { %2433 = vmatpush3.bf16.msra.mxu0 %v2430_v12  ;;  %v1493_v53 = vld [vmem:[%s2933_s20 + $0x20] sm:$0xff]  ;;  %v1494_v54 = vld [vmem:[%s2933_s20 + $0x28] sm:$0xff]  ;;  %s2580_s29 = scalar_lea.vmem %s3029_s16, 512  ;;  %s2584_s25 = sshll.u32 %s2646_s27, 4  ;;  %s2585_s25 = int_to_ptr.vmem [resolvable:$false] %s2584_s25 }
  0x27   : > { %2435 = vmatprep.subr.bf16.mxu0 %v2434_v16  ;;  %p2581_p11 = scmp.ne.s32.totalorder %s3029_s16, %s2580_s29  ;;  %s2586_s23 = scalar_lea.vmem %s2585_s25, 1024 }
  0x28   : > { %1385 = vperm.xlu0 %2578, %v1367_v24   ;;  %p2587_p0 = scmp.lt.s32.totalorder %s3029_s16, %s2585_s25  ;;  %p2588_p1 = scmp.lt.s32.totalorder %s2586_s23, %s2580_s29 }
  0x29   : > { %1522 = vperm.xlu1 %2579, %v1504_v25   ;;  %p2582_p12 = pnand %p2581_p11, %p2767_p5 }
  0x2a   : > { %2437 = vmatpush3.bf16.msra.mxu0 %v2434_v16  ;;  %p2589_p2 = por %p2588_p1, %p2587_p0 }
  0x2b   : > { %2439 = vmatprep.subr.bf16.mxu0 %v2438_v21  ;;  %p2583_p13 = pneg %p2582_p12 }
  0x2c   : > { %1826 = vperm.xlu0 %2578, %v1820_v28   ;;  %v1171_v28 = vadd.s32 1, %v1162_v23 }
  0x2d   : > { %1831 = vperm.xlu1 %2579, %v1821_v29   ;;  %p2590_p3 = pnand %p2589_p2, %p2583_p13 }
  0x2e   : > { %2441 = vmatpush3.bf16.msra.mxu0 %v2438_v21  ;;  %v1159_v21 = vshrl.u32 %v1158_v20, 7 }
  0x2f   : > { %2455 = vmatprep.subr.bf16.mxu0 %v2454_v36 }
  0x30   : > { %1836 = vperm.xlu0 %2578, %v1822_v31   ;;  %v1160_v22 = vadd.s32 8, %v1159_v21  ;;  %v1163_v24 = vadd.s32 1, %v1159_v21  ;;  %vm1172_vm6 = vcmp.eq.s32.totalorder %v1159_v21, %v1171_v28 }
  0x31   : > { %2259 = vmatmul.mubr.msk.f32.vlgmr.msra.gmra.mrb[0].mxu0 %vm569_vm0, %v542_v26  ;;  %1841 = vperm.xlu1 %2579, %v1823_v32  }
  0x32   : > { %2261 = vmatprep.mubr.msk.f32.mxu0 %vm569_vm0, %v543_v27  ;;  %2457 = vmatpush3.bf16.msra.mxu0 %v2454_v36  ;;  %v1164_v25 = vadd.s32 1, %v1160_v22  ;;  %vm1165_vm3 = vcmp.eq.s32.totalorder %v1162_v23, %v1163_v24  ;;  %v2645_v27 = vmov 1.0|1.0   ;;  %vm1173_vm7 = vcmp.eq.s32.totalorder %v1160_v22, %v1171_v28  ;;  %v2087_v36 = vld [vmem:[%s3093_s14] ss:$0 sm:$0xff] }
  0x33   : > { %2459 = vmatprep.subr.bf16.mxu0 %v2458_v7  ;;  %vm2921_vm8 = vmpackc.low %vm1173_vm7, %vm1172_vm6 }
  0x34   : > { %vm1166_vm4 = vcmp.eq.s32.totalorder %v1162_v23, %v1164_v25 }
  0x35   : > { %2262 = vmatmul.mubr.msk.f32.gmra.mrb[2].mxu0 %vm569_vm0, %v544_v30  ;;  %vm2911_vm5 = vmpackc.low %vm1166_vm4, %vm1165_vm3 }
  0x93   : > { %v552_v37 = vpop.permute.xlu0 %551 }
  0x94   : > { %v562_v38 = vpop.permute.xlu1 %561 }
  0x97   : > { %v557_v39 = vpop.permute.xlu0 %556 }
  0x98   : > { %v567_v45 = vpop.permute.xlu1 %566 }
  0x9b   : > { %v1371_v20 = vpop.permute.xlu0 %1370 }
  0x9f   : > { %v1376_v22 = vpop.permute.xlu0 %1375 }
  0xa3   : > { %v1381_v24 = vpop.permute.xlu0 %1380 }
 0x104   : > { %v2260_v40 = vpop.f32.mrb[0].mxu0 }
 0x105   : > { %v654_v41 = vadd.f32 %v2260_v40, %v557_v39  ;;  %v648_v42 = vpop.f32.mrb[1].mxu0  ;;  %v1489_v39 = vld [vmem:[%s2933_s20] sm:$0xff]  ;;  %v1490_v40 = vld [vmem:[%s2933_s20 + $0x8] sm:$0xff] }
 0x106   : > { %v649_v43 = vadd.f32 %v648_v42, %v552_v37 }
 0x107   : > { %v668_v44 = vmax.f32 %v654_v41, 0.0 }
 0x108   : > { %v667_v46 = vmax.f32 %v649_v43, 0.0  ;;  %v2263_v47 = vpop.f32.mrb[2].mxu0 }
 0x109   : > { %v664_v48 = vadd.f32 %v2263_v47, %v567_v45  ;;  %v658_v49 = vpop.f32.mrb[3].mxu0 }
 0x10a   : > { %v659_v50 = vadd.f32 %v658_v49, %v562_v38  ;;  %v2442_v51 = vpack.c.bf16 %v668_v44, %v667_v46  ;;  %v2486_v46 = vpack.c.bf16 %v1490_v40, %v1489_v39 }
 0x10b   : > { %v670_v52 = vmax.f32 %v664_v48, 0.0 }
 0x10c   : > { %v669_v55 = vmax.f32 %v659_v50, 0.0  ;;  %2443 = vmatprep.subr.bf16.mxu1 %v2442_v51  ;;  %v1491_v50 = vld [vmem:[%s2933_s20 + $0x10] sm:$0xff] }
 0x10d   : > { %2445 = vmatpush3.bf16.msra.mxu1 %v2442_v51  ;;  %v1492_v51 = vld [vmem:[%s2933_s20 + $0x18] sm:$0xff] }
 0x10e   : > { %v2446_v56 = vpack.c.bf16 %v670_v52, %v669_v55  ;;  %v2490_v52 = vpack.c.bf16 %v1492_v51, %v1491_v50  ;;  %v2494_v55 = vpack.c.bf16 %v1494_v54, %v1493_v53 }
 0x110   : > { %2447 = vmatprep.subr.bf16.mxu1 %v2446_v56 }
 0x111   : > { %2449 = vmatpush3.bf16.msra.mxu1 %v2446_v56  ;;  %v1497_v56 = vld [vmem:[%s3086_s7] sm:$0xff] }
 0x112   : > { %2451 = vmatprep.subr.bf16.mxu1 %v2450_v57 }
 0x114   : > { %2273 = vmatmul.mubr.msk.f32.vlgmr.msra.gmra.mrb[0].mxu1 %vm683_vm1, %v672_v58  ;;  %v1496_v58 = vld [vmem:[%s2933_s20 + $0x38] sm:$0xff] }
 0x115   : > { %2275 = vmatprep.mubr.msk.f32.mxu1 %vm683_vm1, %v673_v59  ;;  %2453 = vmatpush3.bf16.msra.mxu1 %v2450_v57  ;;  %v1495_v57 = vld [vmem:[%s2933_s20 + $0x30] sm:$0xff] }
 0x116   : > { %2463 = vmatprep.subr.msk.bf16.mxu1 %vm2911_vm5, %v2645_v27  ;;  %v2498_v59 = vpack.c.bf16 %v1496_v58, %v1495_v57 }
 0x118   : > { %2276 = vmatmul.mubr.msk.f32.gmra.mrb[2].mxu1 %vm683_vm1, %v674_v60  ;;  %v1498_v60 = vld [vmem:[%s3086_s7 + $0x8] sm:$0xff] }
 0x119   : > { %2278 = vmatprep.mubr.msk.f32.mxu1 %vm683_vm1, %v675_v61  ;;  %v1499_v61 = vld [vmem:[%s3086_s7 + $0x10] sm:$0xff] }
 0x11c   : > { %2279 = vmatmul.mubr.msk.f32.gmra.mrb[4].mxu1 %vm683_vm1, %v676_v62  ;;  %v1500_v62 = vld [vmem:[%s3086_s7 + $0x18] sm:$0xff] }
 0x11d   : > { %2281 = vmatprep.mubr.msk.f32.mxu1 %vm683_vm1, %v677_v63  ;;  %v1360_v63 = vld [vmem:[%s3084_s5] sm:$0xff] }
 0x120   : > { %2282 = vmatmul.mubr.msk.f32.gmra.mrb[6].mxu1 %vm683_vm1, %v678_v0 }
 0x121   : > { %2284 = vmatprep.mubr.msk.f32.mxu1 %vm683_vm1, %v679_v1 }
 0x124   : > { %2285 = vmatmul.mubr.msk.f32.gmra.mrb[8].mxu1 %vm683_vm1, %v680_v2 }
 0x125   : > { %2287 = vmatprep.mubr.msk.f32.mxu1 %vm683_vm1, %v681_v3 }
 0x128   : > { %2288 = vmatmul.mubr.msk.f32.gmra.mrb[10].mxu1 %vm683_vm1, %v682_v4 }
 0x1e7   : > { %v2274_v8 = vpop.f32.mrb[0].mxu1 }
 0x1e8   : > { %v786_v9 = vpop.f32.mrb[1].mxu1 }
 0x1e9   : > { %2304 = vmatprep.mubr.msk.f32.mxu0 %vm849_vm2, %v786_v9 }
 0x1ea   : > { %2305 = vmatmul.mubr.msk.f32.vlgmr.msra.gmra.mrb[4].mxu0 %vm849_vm2, %v2274_v8 }
 0x1eb   : > { %v2277_v10 = vpop.f32.mrb[2].mxu1  ;;  %2461 = vmatpush3.bf16.msra.mxu0 %v2458_v7 }
 0x1ec   : > { %v796_v11 = vpop.f32.mrb[3].mxu1 }
 0x1ed   : > { %2307 = vmatprep.mubr.msk.f32.mxu0 %vm849_vm2, %v796_v11 }
 0x1ee   : > { %2308 = vmatmul.mubr.msk.f32.gmra.mrb[6].mxu0 %vm849_vm2, %v2277_v10 }
 0x1ef   : > { %v2280_v12 = vpop.f32.mrb[4].mxu1 }
 0x1f0   : > { %v806_v13 = vpop.f32.mrb[5].mxu1 }
 0x1f1   : > { %2294 = vmatprep.mubr.msk.f32.mxu1 %vm849_vm2, %v806_v13  ;;  %v1362_v13 = vld [vmem:[%s3084_s5 + $0x10] sm:$0xff] }
 0x1f2   : > { %2295 = vmatmul.mubr.msk.f32.vlgmr.msra.gmra.mrb[12].mxu1 %vm849_vm2, %v2280_v12  ;;  %v1361_v12 = vld [vmem:[%s3084_s5 + $0x8] sm:$0xff] }
 0x1f3   : > { %v2283_v14 = vpop.f32.mrb[6].mxu1  ;;  %2465 = vmatpush3.bf16.msk.msra.mxu1 %vm2911_vm5, %v2645_v27 }
 0x1f4   : > { %v816_v15 = vpop.f32.mrb[7].mxu1  ;;  %2467 = vmatprep.subr.msk.bf16.mxu1 %vm2921_vm8, %v2645_v27 }
 0x1f5   : > { %2297 = vmatprep.mubr.msk.f32.mxu1 %vm849_vm2, %v816_v15 }
 0x1f6   : > { %2298 = vmatmul.mubr.msk.f32.gmra.mrb[14].mxu1 %vm849_vm2, %v2283_v14  ;;  %v1363_v14 = vld [vmem:[%s3084_s5 + $0x18] sm:$0xff] }
 0x1f7   : > { %v2286_v16 = vpop.f32.mrb[8].mxu1 }
 0x1f8   : > { %v826_v17 = vpop.f32.mrb[9].mxu1 }
 0x1f9   : > { %2314 = vmatprep.mubr.msk.f32.mxu0 %vm849_vm2, %v826_v17 }
 0x1fa   : > { %2315 = vmatmul.mubr.msk.f32.vlgmr.msra.gmra.mrb[4].mxu0 %vm849_vm2, %v2286_v16 }
 0x1fb   : > { %v2289_v18 = vpop.f32.mrb[10].mxu1 }
 0x1fc   : > { %v836_v19 = vpop.f32.mrb[11].mxu1 }
 0x1fd   : > { %2317 = vmatprep.mubr.msk.f32.mxu0 %vm849_vm2, %v836_v19  ;;  %v1508_v19 = vpop.permute.xlu1 %1507 }
 0x1fe   : > { %2318 = vmatmul.mubr.msk.f32.gmra.mrb[6].mxu0 %vm849_vm2, %v2289_v18 }
 0x1ff   : > { %2356 = vmatprep.mubr.msk.f32.mxu0 %vm569_vm0, %v1360_v63 }
 0x201   : > { %v1513_v21 = vpop.permute.xlu1 %1512 }
 0x205   : > { %v1518_v23 = vpop.permute.xlu1 %1517 }
 0x2c5   : > { %v2296_v30 = vpop.f32.mrb[12].mxu1 }
 0x2c6   : > { %v928_v31 = vpop.f32.mrb[13].mxu1 }
 0x2c9   : > { %v2299_v32 = vpop.f32.mrb[14].mxu1 }
 0x2ca   : > { %v938_v33 = vpop.f32.mrb[15].mxu1 }
 0x2cd   : > { %v2316_v34 = vpop.f32.mrb[4].mxu0 }
 0x2ce   : > { %v2526_v35 = vadd.f32 %v2316_v34, %v2296_v30  ;;  %v1124_v37 = vpop.f32.mrb[5].mxu0 }
 0x2cf   : > { %v2527_v38 = vadd.f32 %v1124_v37, %v928_v31 }
 0x2d0   : > { %v1155_v43 = vadd.f32 %v2526_v35, %v2087_v36  ;;  %v1386_v35 = vpop.permute.xlu0 %1385 }
 0x2d1   : > { %v1154_v41 = vadd.f32 %v2527_v38, %v2087_v36  ;;  %v2319_v42 = vpop.f32.mrb[6].mxu0 }
 0x2d2   : > { %v2528_v44 = vadd.f32 %v2319_v42, %v2299_v32  ;;  %v1134_v45 = vpop.f32.mrb[7].mxu0  ;;  %v1523_v32 = vpop.permute.xlu1 %1522 }
 0x2d3   : > { %v2529_v47 = vadd.f32 %v1134_v45, %v938_v33  ;;  %2324 = vmatprep.mubr.msk.f32.mxu1 %vm849_vm2, %v1154_v41 }
 0x2d4   : > { %2325 = vmatmul.mubr.msk.f32.vlgmr.msra.gmra.mrb[16].mxu1 %vm849_vm2, %v1155_v43  ;;  %v1157_v49 = vadd.f32 %v2528_v44, %v2087_v36 }
 0x2d5   : > { %v1156_v48 = vadd.f32 %v2529_v47, %v2087_v36  ;;  %2469 = vmatpush3.bf16.msk.msra.mxu1 %vm2921_vm8, %v2645_v27 }
 0x2d6   : > { %2487 = vmatprep.subr.bf16.mxu1 %v2486_v46 }
 0x2d7   : > { %2327 = vmatprep.mubr.msk.f32.mxu1 %vm849_vm2, %v1156_v48 }
 0x2d8   : > { %2328 = vmatmul.mubr.msk.f32.gmra.mrb[18].mxu1 %vm849_vm2, %v1157_v49 }
 0x2d9   : > { %2334 = vmatprep.mubr.msk.f32.mxu1 %vm849_vm2, %v1154_v41 }
 0x2dc   : > { %2335 = vmatmul.mubr.msk.f32.vlgmr.msra.gmra.mrb[20].mxu1 %vm849_vm2, %v1155_v43 }
 0x2dd   : > { %2489 = vmatpush3.bf16.msra.mxu1 %v2486_v46  ;;  %2337 = vmatprep.mubr.msk.f32.mxu1 %vm849_vm2, %v1156_v48 }
 0x2de   : > { %2491 = vmatprep.subr.bf16.mxu1 %v2490_v52 }
 0x2e0   : > { %2338 = vmatmul.mubr.msk.f32.gmra.mrb[22].mxu1 %vm849_vm2, %v1157_v49 }
 0x2e1   : > { %2493 = vmatpush3.bf16.msra.mxu1 %v2490_v52  ;;  %2378 = vmatprep.mubr.msk.f32.mxu1 %vm569_vm0, %v1497_v56 }
 0x2e2   : > { %2495 = vmatprep.subr.bf16.mxu1 %v2494_v55 }
 0x2e5   : > { %2497 = vmatpush3.bf16.msra.mxu1 %v2494_v55  ;;  %v1816_v55 = vld [vmem:[%s3088_s9] sm:$0xff] }
 0x2e6   : > { %2499 = vmatprep.subr.bf16.mxu1 %v2498_v59 }
 0x2e9   : > { %2501 = vmatpush3.bf16.msra.mxu1 %v2498_v59 }
 0x2ea   : > { %2507 = vmatprep.subr.msk.bf16.mxu1 %vm2921_vm8, %v2645_v27 }
 0x2ec   : > { %2379 = vmatmul.mubr.msk.f32.vlgmr.msra.gmra.mrb[24].mxu1 %vm569_vm0, %v1498_v60 }
 0x2ed   : > { %2381 = vmatprep.mubr.msk.f32.mxu1 %vm569_vm0, %v1499_v61  ;;  %2509 = vmatpush3.bf16.msk.msra.mxu1 %vm2921_vm8, %v2645_v27 }
 0x2f0   : > { %2382 = vmatmul.mubr.msk.f32.gmra.mrb[26].mxu1 %vm569_vm0, %v1500_v62 }
 0x3a7   : > { %v2326_v0 = vpop.f32.mrb[16].mxu1 }
 0x3a8   : > { %v1256_v1 = vpop.f32.mrb[17].mxu1 }
 0x3a9   : > { %v2470_v2 = vpack.c.bf16 %v2326_v0, %v1256_v1 }
 0x3ab   : > { %v2329_v3 = vpop.f32.mrb[18].mxu1  ;;  %2471 = vmatprep.subr.bf16.mxu0 %v2470_v2 }
 0x3ac   : > { %v1266_v4 = vpop.f32.mrb[19].mxu1  ;;  %2473 = vmatpush3.bf16.msra.mxu0 %v2470_v2 }
 0x3ad   : > { %v2474_v5 = vpack.c.bf16 %v2329_v3, %v1266_v4  ;;  %v1817_v4 = vld [vmem:[%s3088_s9 + $0x8] sm:$0xff] }
 0x3af   : > { %v2336_v6 = vpop.f32.mrb[20].mxu1  ;;  %2475 = vmatprep.subr.bf16.mxu0 %v2474_v5 }
 0x3b0   : > { %v1341_v7 = vpop.f32.mrb[21].mxu1  ;;  %2477 = vmatpush3.bf16.msra.mxu0 %v2474_v5  ;;  %v1818_v5 = vld [vmem:[%s3088_s9 + $0x10] sm:$0xff] }
 0x3b1   : > { %v2478_v8 = vpack.c.bf16 %v2336_v6, %v1341_v7  ;;  %v1819_v6 = vld [vmem:[%s3088_s9 + $0x18] sm:$0xff]  ;;  %v1832_v7 = vpop.permute.xlu1 %1831 }
 0x3b3   : > { %v2339_v9 = vpop.f32.mrb[22].mxu1  ;;  %2479 = vmatprep.subr.bf16.mxu0 %v2478_v8 }
 0x3b4   : > { %v1351_v10 = vpop.f32.mrb[23].mxu1  ;;  %2481 = vmatpush3.bf16.msra.mxu0 %v2478_v8  ;;  %v1827_v8 = vpop.permute.xlu0 %1826 }
 0x3b5   : > { %v2482_v11 = vpack.c.bf16 %v2339_v9, %v1351_v10 }
 0x3b7   : > { %2483 = vmatprep.subr.bf16.mxu0 %v2482_v11 }
 0x3b8   : > { %2485 = vmatpush3.bf16.msra.mxu0 %v2482_v11 }
 0x3b9   : > { %2503 = vmatprep.subr.msk.bf16.mxu0 %vm2911_vm5, %v2645_v27 }
 0x3bb   : > { %2357 = vmatmul.mubr.msk.f32.vlgmr.msra.gmra.mrb[8].mxu0 %vm569_vm0, %v1361_v12 }
 0x3bc   : > { %2359 = vmatprep.mubr.msk.f32.mxu0 %vm569_vm0, %v1362_v13  ;;  %2505 = vmatpush3.bf16.msk.msra.mxu0 %vm2911_vm5, %v2645_v27 }
 0x3bf   : > { %v2380_v15 = vpop.f32.mrb[24].mxu1  ;;  %2360 = vmatmul.mubr.msk.f32.gmra.mrb[10].mxu0 %vm569_vm0, %v1363_v14  ;;  %v1842_v14 = vpop.permute.xlu1 %1841 }
 0x3c0   : > { %v1603_v16 = vpop.f32.mrb[25].mxu1  ;;  %v1609_v25 = vadd.f32 %v2380_v15, %v1513_v21 }
 0x3c1   : > { %v1604_v28 = vadd.f32 %v1603_v16, %v1508_v19 }
 0x3c2   : > { %v1623_v27 = vmax.f32 %v1609_v25, 0.0 }
 0x3c3   : > { %v2383_v17 = vpop.f32.mrb[26].mxu1  ;;  %v1622_v36 = vmax.f32 %v1604_v28, 0.0 }
 0x3c4   : > { %v1613_v18 = vpop.f32.mrb[27].mxu1  ;;  %v1619_v33 = vadd.f32 %v2383_v17, %v1523_v32  ;;  %v1837_v17 = vpop.permute.xlu0 %1836 }
 0x3c5   : > { %v1614_v37 = vadd.f32 %v1613_v18, %v1518_v23 }
 0x3c6   : > { %v1625_v45 = vmax.f32 %v1619_v33, 0.0 }
 0x3c7   : > { %v1624_v47 = vmax.f32 %v1614_v37, 0.0 }
 0x48e   : > { %v2358_v29 = vpop.f32.mrb[8].mxu0 }
 0x48f   : > { %v1472_v30 = vadd.f32 %v2358_v29, %v1376_v22  ;;  %v1466_v31 = vpop.f32.mrb[9].mxu0 }
 0x490   : > { %v1467_v26 = vadd.f32 %v1466_v31, %v1371_v20 }
 0x491   : > { %v1486_v34 = vmax.f32 %v1472_v30, 0.0 }
 0x492   : > { %v1485_v38 = vmax.f32 %v1467_v26, 0.0  ;;  %v2361_v39 = vpop.f32.mrb[10].mxu0 }
 0x493   : > { %v1627_v40 = vadd.f32 %v1623_v27, %v1486_v34  ;;  %v1482_v41 = vadd.f32 %v2361_v39, %v1386_v35  ;;  %v1476_v42 = vpop.f32.mrb[11].mxu0 }
 0x494   : > { %v1626_v43 = vadd.f32 %v1622_v36, %v1485_v38  ;;  %v1477_v44 = vadd.f32 %v1476_v42, %v1381_v24 }
 0x495   : > { %v1488_v46 = vmax.f32 %v1482_v41, 0.0  ;;  %v1631_v50 = vmax.f32 %v1627_v40, 0.0 }
 0x496   : > { %v1630_v48 = vmax.f32 %v1626_v43, 0.0  ;;  %v1487_v49 = vmax.f32 %v1477_v44, 0.0 }
 0x497   : > { %v1629_v51 = vadd.f32 %v1625_v45, %v1488_v46 }
 0x498   : > { %v1628_v52 = vadd.f32 %v1624_v47, %v1487_v49  ;;  %2388 = vmatprep.mubr.msk.f32.mxu0 %vm849_vm2, %v1630_v48  ;;  %2398 = vmatprep.mubr.msk.f32.mxu1 %vm849_vm2, %v1630_v48 }
 0x499   : > { %2389 = vmatmul.mubr.msk.f32.vlgmr.msra.gmra.mrb[12].mxu0 %vm849_vm2, %v1631_v50  ;;  %2399 = vmatmul.mubr.msk.f32.vlgmr.msra.gmra.mrb[28].mxu1 %vm849_vm2, %v1631_v50  ;;  %v1633_v54 = vmax.f32 %v1629_v51, 0.0 }
 0x49a   : > { %v1632_v53 = vmax.f32 %v1628_v52, 0.0 }
 0x49c   : > { %2391 = vmatprep.mubr.msk.f32.mxu0 %vm849_vm2, %v1632_v53  ;;  %2401 = vmatprep.mubr.msk.f32.mxu1 %vm849_vm2, %v1632_v53 }
 0x49d   : > { %2392 = vmatmul.mubr.msk.f32.gmra.mrb[14].mxu0 %vm849_vm2, %v1633_v54  ;;  %2402 = vmatmul.mubr.msk.f32.gmra.mrb[30].mxu1 %vm849_vm2, %v1633_v54 }
 0x49e   : > { %2420 = vmatprep.mubr.msk.f32.mxu0 %vm569_vm0, %v1816_v55 }
 0x56c   : > { %v2390_v56 = vpop.f32.mrb[12].mxu0  ;;  %v2400_v57 = vpop.f32.mrb[28].mxu1 }
 0x56d   : > { %v1712_v58 = vpop.f32.mrb[13].mxu0  ;;  %v1797_v59 = vpop.f32.mrb[29].mxu1 }
 0x56e   : > { %v2510_v60 = vpack.c.bf16 %v2390_v56, %v1712_v58  ;;  %v2518_v61 = vpack.c.bf16 %v2400_v57, %v1797_v59 }
 0x570   : > { %v2393_v62 = vpop.f32.mrb[14].mxu0  ;;  %v2403_v63 = vpop.f32.mrb[30].mxu1  ;;  %2511 = vmatprep.subr.bf16.mxu0 %v2510_v60 }
 0x571   : > { %v1722_v0 = vpop.f32.mrb[15].mxu0  ;;  %v1807_v1 = vpop.f32.mrb[31].mxu1  ;;  %2513 = vmatpush3.bf16.msra.mxu0 %v2510_v60 }
 0x572   : > { %v2514_v2 = vpack.c.bf16 %v2393_v62, %v1722_v0  ;;  %v2522_v3 = vpack.c.bf16 %v2403_v63, %v1807_v1 }
 0x574   : > { %2515 = vmatprep.subr.bf16.mxu0 %v2514_v2 }
 0x575   : > { %2517 = vmatpush3.bf16.msra.mxu0 %v2514_v2 }
 0x576   : > { %2519 = vmatprep.subr.bf16.mxu0 %v2518_v61 }
 0x579   : > { %2521 = vmatpush3.bf16.msra.mxu0 %v2518_v61 }
 0x57a   : > { %2523 = vmatprep.subr.bf16.mxu0 %v2522_v3 }
 0x57d   : > { %2525 = vmatpush3.bf16.msra.mxu0 %v2522_v3 }
 0x580   : > { %2421 = vmatmul.mubr.msk.f32.vlgmr.msra.gmra.mrb[16].mxu0 %vm569_vm0, %v1817_v4 }
 0x581   : > { %2423 = vmatprep.mubr.msk.f32.mxu0 %vm569_vm0, %v1818_v5 }
 0x584   : > { %2424 = vmatmul.mubr.msk.f32.gmra.mrb[18].mxu0 %vm569_vm0, %v1819_v6 }
 0x653   : > { %v2422_v9 = vpop.f32.mrb[16].mxu0 }
 0x654   : > { %v1928_v10 = vadd.f32 %v2422_v9, %v1832_v7  ;;  %v1922_v11 = vpop.f32.mrb[17].mxu0 }
 0x655   : > { %v1923_v12 = vadd.f32 %v1922_v11, %v1827_v8 }
 0x656   : > { %v1942_v13 = vmax.f32 %v1928_v10, 0.0 }
 0x657   : > { %v1941_v15 = vmax.f32 %v1923_v12, 0.0  ;;  %v2425_v16 = vpop.f32.mrb[18].mxu0 }
 0x658   : > { %1946 = vst.msk [vmem:[%s517_s26 + $0x8] sm:$0xff] %vm849_vm2, %v1942_v13  ;;  %v1938_v18 = vadd.f32 %v2425_v16, %v1842_v14  ;;  %v1932_v19 = vpop.f32.mrb[19].mxu0 }
 0x659   : > { %1945 = vst.msk [vmem:[%s517_s26] sm:$0xff] %vm849_vm2, %v1941_v15  ;;  %v1933_v20 = vadd.f32 %v1932_v19, %v1837_v17 }
 0x65a   : > { %v1944_v21 = vmax.f32 %v1938_v18, 0.0 }
 0x65b   : > { %v1943_v22 = vmax.f32 %v1933_v20, 0.0 }
 0x65c   : > { %1948 = vst.msk [vmem:[%s517_s26 + $0x18] sm:$0xff] %vm849_vm2, %v1944_v21 }
 0x65d   : > { %1947 = vst.msk [vmem:[%s517_s26 + $0x10] sm:$0xff] %vm849_vm2, %v1943_v22 }
 0x65e   : > { %2593 = shalt.err (!%p2590_p3)
}
 0x65f   : > { %s2594_s17 = scalar_lea.hbm %s3034_s24, 512  ;;  %s2598_s0 = scalar_lea.hbm %s3094_s15, 1024 }
 0x660   : > { %p2595_p4 = scmp.ne.s32.totalorder %s3034_s24, %s2594_s17  ;;  %p2599_p9 = scmp.lt.u32.totalorder %s3034_s24, %s3094_s15 }
 0x661   : > { %p2600_p10 = scmp.lt.u32.totalorder %s2598_s0, %s2594_s17  ;;  %p2602_p12 = scmp.lt.u32.totalorder %s2594_s17, %s3034_s24 }
 0x662   : > { %p2596_p7 = pnand %p2595_p4, %p2767_p5 }
 0x663   : > { %p2601_p11 = por %p2600_p10, %p2599_p9 }
 0x664   : > { %p2597_p8 = pneg %p2596_p7 }
 0x665   : > { %p2603_p13 = por %p2602_p12, %p2601_p11 }
 0x667   : > { %p2604_p0 = pnand %p2603_p13, %p2597_p8 }
 0x669   : > { %2607 = shalt.err (!%p2604_p0)
}
 0x66a   : > { %s2647_s29 = smov 128   ;;  %s2648_s25 = smov 8  }
 0x66b   : > { %2535 = dma.vmem_to_hbm [thread:$0]  (%p2767_p5), %s3029_s16, 512, %s3034_s24, %s3038_s22, %s2647_s29, %s2647_s29, %s2648_s25  }
 0x66c PF: > { %p2541_p1 = scmp.ge.s32.totalorder %s2642_s21, 2  ;;  %s1978_s26 = sand.u32 1, %s2630_s18  }
 0x66d   : > { %s1979_s17 = scalar_lea.sflag [#allocation3], %s1978_s26 }
 0x66e   : > { %p2538_p2 = pnand %p2541_p1, %p2771_p6 }
 0x670   : > { %2625 = dma.done.wait (!%p2538_p2), %s1979_s17, 512  }
 0x671   : > { %2627 = vsyncadd (!%p2538_p2), %s1979_s17, 4294966784  ;;  %s3114_s21 = sld [smem:[#allocation6_spill]]  ;;  %s3115_s30 = sld [smem:[#allocation5_spill]] }
 0x672   : > { %s3116_s20 = sld [smem:[#allocation7_spill]]  ;;  %s3117_s18 = smov %s2634_s19 }
 0x677   : > { %p25_p3 = scmp.ge.s32.totalorder %s3114_s21, 4   ;;  %s3118_s19 = smov %s3115_s30 }
 0x679   :  { %27 = sbr.rel (!%p25_p3) target bundleno = 5 (0x5), region = 121 }
 0x680   :  { %1984 = vsyncpa [#allocation3], 1 }
 0x681   :  { %1986 = vsyncpa [#allocation3 + $0x1], 1 }

</bundles_post_ra>
